<compile_context>
chip_gen: v5e
topology: v5e:2x2
jax: 0.10.0
libtpu: 0.0.40
codegen_flags: <defaults>
</compile_context>

<pallas_src>
import functools

import jax
import jax.numpy as jnp
from jax.experimental import pallas as pl
from jax.experimental.pallas import tpu as pltpu

# ---- model hyper-parameters (small, consistent with the module) ----
ONE_HOT_DIM = 16   # one_hot_dim (input + output vocab)
HIDDEN_DIM = 32    # hidden_dim
N_LAYERS = 2       # n_layers
BATCH = 2
SEQ = 8
IF_EMBEDDING = False

V_PAD = 128                         # lane-dense padded vocab width
B_PAD = max(8, -(-BATCH // 8) * 8)  # sublane-aligned padded batch
NEG_BIG = -1e30                     # padded-class bias -> exp() underflows to 0


def _rnn_kernel(n_layers, seq_len, batch_pad, *refs):
    """refs = (x_flat, [w_ihT, w_hhT, bias] * n_layers, w_fcT, b_fc, out_ref, hid_ref)."""
    x_ref = refs[0]                            # (S*Bp, in_dim) time-major
    layer_refs = refs[1:1 + 3 * n_layers]
    w_fc_ref = refs[1 + 3 * n_layers]          # (H, V_PAD)  pre-transposed, lane-padded
    b_fc_ref = refs[2 + 3 * n_layers]          # (1, V_PAD)  padded lanes = -1e30
    out_ref = refs[3 + 3 * n_layers]           # (S*Bp, V_PAD) time-major probs
    hid_ref = refs[4 + 3 * n_layers]           # (n_layers*Bp, H)

    Bp, S = batch_pad, seq_len
    H = hid_ref.shape[1]

    inp = x_ref[...]                           # (S*Bp, in_dim): all timesteps at once
    finals = []
    for layer in range(n_layers):
        w_ih = layer_refs[3 * layer][...]      # (in_dim, H)  pre-transposed
        w_hh = layer_refs[3 * layer + 1][...]  # (H, H)       pre-transposed
        bias = layer_refs[3 * layer + 2][...]  # (1, H)       b_ih + b_hh pre-summed

        # Hoisted input projection: one matmul for all S timesteps, bias added once.
        xproj = jnp.dot(inp, w_ih, preferred_element_type=jnp.float32) + bias
        # Sublane-aligned per-timestep views (Bp is a multiple of 8).
        xproj_t = [xproj[t * Bp:(t + 1) * Bp, :] for t in range(S)]

        h = jnp.zeros((Bp, H), jnp.float32)
        outs = []
        for t in range(S):                     # static unroll; S is small
            h = jnp.tanh(
                xproj_t[t]
                + jnp.dot(h, w_hh, preferred_element_type=jnp.float32))
            outs.append(h)
        finals.append(h)
        # Next layer's input: time-major slab kept in registers (aligned concat).
        inp = jnp.concatenate(outs, axis=0)    # (S*Bp, H)

    # FC + softmax on the time-major slab; wrapper reindexes to batch-major.
    logits = (jnp.dot(inp, w_fc_ref[...], preferred_element_type=jnp.float32)
              + b_fc_ref[...])                 # (S*Bp, V_PAD)
    m = jnp.max(logits, axis=-1, keepdims=True)
    e = jnp.exp(logits - m)
    out_ref[...] = e * pl.reciprocal(jnp.sum(e, axis=-1, keepdims=True), approx=True)

    hid_ref[...] = jnp.concatenate(finals, axis=0)   # (n_layers*Bp, H)


def init_params(key, one_hot_dim, hidden_dim, n_layers):
    """Deterministic params, PyTorch-style uniform(-1/sqrt(H), 1/sqrt(H))."""
    bound = 1.0 / (hidden_dim ** 0.5)
    params = {"layers": [], "fc": None}
    for l in range(n_layers):
        in_dim = one_hot_dim if l == 0 else hidden_dim
        key, k1, k2, k3, k4 = jax.random.split(key, 5)
        w_ih = jax.random.uniform(k1, (hidden_dim, in_dim), jnp.float32, -bound, bound)
        w_hh = jax.random.uniform(k2, (hidden_dim, hidden_dim), jnp.float32, -bound, bound)
        b_ih = jax.random.uniform(k3, (hidden_dim,), jnp.float32, -bound, bound)
        b_hh = jax.random.uniform(k4, (hidden_dim,), jnp.float32, -bound, bound)
        params["layers"].append((w_ih, w_hh, b_ih, b_hh))
    key, k1, k2 = jax.random.split(key, 3)
    w_fc = jax.random.uniform(k1, (one_hot_dim, hidden_dim), jnp.float32, -bound, bound)
    b_fc = jax.random.uniform(k2, (one_hot_dim,), jnp.float32, -bound, bound)
    params["fc"] = (w_fc, b_fc)
    return params


def prepare_kernel_params(params):
    """One-time prep: transpose weights, pre-sum RNN biases, lane-pad the FC."""
    H = HIDDEN_DIM
    V = ONE_HOT_DIM
    flat = []
    for (w_ih, w_hh, b_ih, b_hh) in params["layers"]:
        flat += [jnp.asarray(w_ih.T, jnp.float32),
                 jnp.asarray(w_hh.T, jnp.float32),
                 jnp.asarray((b_ih + b_hh).reshape(1, H), jnp.float32)]
    w_fc, b_fc = params["fc"]
    w_fc_pad = jnp.zeros((H, V_PAD), jnp.float32).at[:, :V].set(w_fc.T)
    b_fc_pad = jnp.full((1, V_PAD), NEG_BIG, jnp.float32).at[0, :V].set(b_fc)
    flat += [w_fc_pad, b_fc_pad]
    return tuple(flat)


@jax.jit
def rnn_forward_pallas(x, prepared):
    """x: (B, S, one_hot_dim) f32. Returns (probs (B*S, V), hidden (n_layers, B, H))."""
    B, S, V = x.shape
    H = HIDDEN_DIM
    n_layers = (len(prepared) - 2) // 3

    # Glue (outside the kernel): time-major, batch padded to a sublane multiple.
    x_tm = jnp.transpose(x, (1, 0, 2)).astype(jnp.float32)            # (S, B, V)
    x_tm = jnp.pad(x_tm, ((0, 0), (0, B_PAD - B), (0, 0)))            # (S, Bp, V)
    x_flat = x_tm.reshape(S * B_PAD, V)                               # (S*Bp, V)

    vmem = pltpu.MemorySpace.VMEM
    kernel = functools.partial(_rnn_kernel, n_layers, S, B_PAD)

    probs_tm, hid_flat = pl.pallas_call(
        kernel,
        out_shape=(jax.ShapeDtypeStruct((S * B_PAD, V_PAD), jnp.float32),
                   jax.ShapeDtypeStruct((n_layers * B_PAD, H), jnp.float32)),
        in_specs=[pl.BlockSpec(memory_space=vmem)] * (1 + len(prepared)),
        out_specs=(pl.BlockSpec(memory_space=vmem),
                   pl.BlockSpec(memory_space=vmem)),
    )(x_flat, *prepared)

    # Reindex the lane-dense time-major kernel output to torch's layout.
    probs = (probs_tm.reshape(S, B_PAD, V_PAD)[:, :B, :V]
             .transpose(1, 0, 2)
             .reshape(B * S, V))
    hidden = hid_flat.reshape(n_layers, B_PAD, H)[:, :B, :]
    return probs, hidden


def rnn_forward_ref(x, params):
    """Pure-JAX reference mirroring the PyTorch semantics."""
    B, S, V = x.shape
    H = HIDDEN_DIM
    inp = x
    finals = []
    for (w_ih, w_hh, b_ih, b_hh) in params["layers"]:
        h = jnp.zeros((B, H), jnp.float32)
        outs = []
        for t in range(S):
            h = jnp.tanh(inp[:, t] @ w_ih.T + b_ih + h @ w_hh.T + b_hh)
            outs.append(h)
        inp = jnp.stack(outs, axis=1)
        finals.append(h)
    hidden = jnp.stack(finals, axis=0)
    w_fc, b_fc = params["fc"]
    logits = inp.reshape(-1, H) @ w_fc.T + b_fc
    probs = jax.nn.softmax(logits, axis=1)
    return probs, hidden


if __name__ == "__main__":
    key = jax.random.PRNGKey(0)
    key, pkey, xkey = jax.random.split(key, 3)

    params = init_params(pkey, ONE_HOT_DIM, HIDDEN_DIM, N_LAYERS)
    prepared = prepare_kernel_params(params)   # one-time weight prep

    # One-hot input sequence (if_embedding=False => float one-hot tokens).
    tok = jax.random.randint(xkey, (BATCH, SEQ), 0, ONE_HOT_DIM)
    x = jax.nn.one_hot(tok, ONE_HOT_DIM, dtype=jnp.float32)   # (B, S, one_hot_dim)

    probs, hidden = rnn_forward_pallas(x, prepared)
    probs = jax.block_until_ready(probs)
    hidden = jax.block_until_ready(hidden)

    probs_ref, hidden_ref = rnn_forward_ref(x, params)
    assert probs.shape == (BATCH * SEQ, ONE_HOT_DIM)
    assert hidden.shape == (N_LAYERS, BATCH, HIDDEN_DIM)
    # Hidden-state path is exact f32 math -> tight tolerance.
    assert jnp.allclose(hidden, hidden_ref, atol=1e-5, rtol=1e-5)
    # Softmax uses the EUP approximate reciprocal -> modest tolerance.
    assert jnp.allclose(probs, probs_ref, atol=1e-2, rtol=1e-2)
    assert jnp.allclose(jnp.sum(probs, axis=1), 1.0, atol=1e-2)
    print("KERNEL_OK")
</pallas_src>

<mosaic_0001>
module attributes {stable_mosaic.version = 11 : i64} {
  func.func @_rnn_kernel(%arg0: memref<64x16xf32, #tpu.memory_space<vmem>>, %arg1: memref<16x32xf32, #tpu.memory_space<vmem>>, %arg2: memref<32x32xf32, #tpu.memory_space<vmem>>, %arg3: memref<1x32xf32, #tpu.memory_space<vmem>>, %arg4: memref<32x32xf32, #tpu.memory_space<vmem>>, %arg5: memref<32x32xf32, #tpu.memory_space<vmem>>, %arg6: memref<1x32xf32, #tpu.memory_space<vmem>>, %arg7: memref<32x128xf32, #tpu.memory_space<vmem>>, %arg8: memref<1x128xf32, #tpu.memory_space<vmem>>, %arg9: memref<64x128xf32, #tpu.memory_space<vmem>>, %arg10: memref<16x32xf32, #tpu.memory_space<vmem>>) attributes {dimension_semantics = [], scalar_prefetch = 0 : i64, scratch_operands = 0 : i64, tpu.core_type = #tpu.core_type<tc>} {
    %c0 = arith.constant 0 : index
    %c0_0 = arith.constant 0 : index
    %0 = vector.load %arg0[%c0, %c0_0] : memref<64x16xf32, #tpu.memory_space<vmem>>, vector<64x16xf32>
    %c0_1 = arith.constant 0 : index
    %c0_2 = arith.constant 0 : index
    %1 = vector.load %arg1[%c0_1, %c0_2] : memref<16x32xf32, #tpu.memory_space<vmem>>, vector<16x32xf32>
    %c0_3 = arith.constant 0 : index
    %c0_4 = arith.constant 0 : index
    %2 = vector.load %arg2[%c0_3, %c0_4] : memref<32x32xf32, #tpu.memory_space<vmem>>, vector<32x32xf32>
    %c0_5 = arith.constant 0 : index
    %c0_6 = arith.constant 0 : index
    %3 = vector.load %arg3[%c0_5, %c0_6] : memref<1x32xf32, #tpu.memory_space<vmem>>, vector<1x32xf32>
    %cst = arith.constant dense<0.000000e+00> : vector<64x32xf32>
    %4 = tpu.matmul %0, %1, %cst {dimension_numbers = #tpu.dot_dimension_numbers<[1], [0], [0], [1], [0, 0, 1, 1], [], []>} : vector<64x16xf32>, vector<16x32xf32>, vector<64x32xf32> -> vector<64x32xf32>
    %5 = vector.broadcast %3 : vector<1x32xf32> to vector<64x32xf32>
    %6 = arith.addf %4, %5 : vector<64x32xf32>
    %7 = vector.extract_strided_slice %6 {offsets = [0, 0], sizes = [8, 32], strides = [1, 1]} : vector<64x32xf32> to vector<8x32xf32>
    %8 = vector.extract_strided_slice %6 {offsets = [8, 0], sizes = [8, 32], strides = [1, 1]} : vector<64x32xf32> to vector<8x32xf32>
    %9 = vector.extract_strided_slice %6 {offsets = [16, 0], sizes = [8, 32], strides = [1, 1]} : vector<64x32xf32> to vector<8x32xf32>
    %10 = vector.extract_strided_slice %6 {offsets = [24, 0], sizes = [8, 32], strides = [1, 1]} : vector<64x32xf32> to vector<8x32xf32>
    %11 = vector.extract_strided_slice %6 {offsets = [32, 0], sizes = [8, 32], strides = [1, 1]} : vector<64x32xf32> to vector<8x32xf32>
    %12 = vector.extract_strided_slice %6 {offsets = [40, 0], sizes = [8, 32], strides = [1, 1]} : vector<64x32xf32> to vector<8x32xf32>
    %13 = vector.extract_strided_slice %6 {offsets = [48, 0], sizes = [8, 32], strides = [1, 1]} : vector<64x32xf32> to vector<8x32xf32>
    %14 = vector.extract_strided_slice %6 {offsets = [56, 0], sizes = [8, 32], strides = [1, 1]} : vector<64x32xf32> to vector<8x32xf32>
    %cst_7 = arith.constant 0.000000e+00 : f32
    %15 = vector.broadcast %cst_7 : f32 to vector<8x32xf32>
    %cst_8 = arith.constant dense<0.000000e+00> : vector<8x32xf32>
    %16 = tpu.matmul %15, %2, %cst_8 {dimension_numbers = #tpu.dot_dimension_numbers<[1], [0], [0], [1], [0, 0, 1, 1], [], []>} : vector<8x32xf32>, vector<32x32xf32>, vector<8x32xf32> -> vector<8x32xf32>
    %17 = arith.addf %7, %16 : vector<8x32xf32>
    %18 = math.tanh %17 : vector<8x32xf32>
    %cst_9 = arith.constant dense<0.000000e+00> : vector<8x32xf32>
    %19 = tpu.matmul %18, %2, %cst_9 {dimension_numbers = #tpu.dot_dimension_numbers<[1], [0], [0], [1], [0, 0, 1, 1], [], []>} : vector<8x32xf32>, vector<32x32xf32>, vector<8x32xf32> -> vector<8x32xf32>
    %20 = arith.addf %8, %19 : vector<8x32xf32>
    %21 = math.tanh %20 : vector<8x32xf32>
    %cst_10 = arith.constant dense<0.000000e+00> : vector<8x32xf32>
    %22 = tpu.matmul %21, %2, %cst_10 {dimension_numbers = #tpu.dot_dimension_numbers<[1], [0], [0], [1], [0, 0, 1, 1], [], []>} : vector<8x32xf32>, vector<32x32xf32>, vector<8x32xf32> -> vector<8x32xf32>
    %23 = arith.addf %9, %22 : vector<8x32xf32>
    %24 = math.tanh %23 : vector<8x32xf32>
    %cst_11 = arith.constant dense<0.000000e+00> : vector<8x32xf32>
    %25 = tpu.matmul %24, %2, %cst_11 {dimension_numbers = #tpu.dot_dimension_numbers<[1], [0], [0], [1], [0, 0, 1, 1], [], []>} : vector<8x32xf32>, vector<32x32xf32>, vector<8x32xf32> -> vector<8x32xf32>
    %26 = arith.addf %10, %25 : vector<8x32xf32>
    %27 = math.tanh %26 : vector<8x32xf32>
    %cst_12 = arith.constant dense<0.000000e+00> : vector<8x32xf32>
    %28 = tpu.matmul %27, %2, %cst_12 {dimension_numbers = #tpu.dot_dimension_numbers<[1], [0], [0], [1], [0, 0, 1, 1], [], []>} : vector<8x32xf32>, vector<32x32xf32>, vector<8x32xf32> -> vector<8x32xf32>
    %29 = arith.addf %11, %28 : vector<8x32xf32>
    %30 = math.tanh %29 : vector<8x32xf32>
    %cst_13 = arith.constant dense<0.000000e+00> : vector<8x32xf32>
    %31 = tpu.matmul %30, %2, %cst_13 {dimension_numbers = #tpu.dot_dimension_numbers<[1], [0], [0], [1], [0, 0, 1, 1], [], []>} : vector<8x32xf32>, vector<32x32xf32>, vector<8x32xf32> -> vector<8x32xf32>
    %32 = arith.addf %12, %31 : vector<8x32xf32>
    %33 = math.tanh %32 : vector<8x32xf32>
    %cst_14 = arith.constant dense<0.000000e+00> : vector<8x32xf32>
    %34 = tpu.matmul %33, %2, %cst_14 {dimension_numbers = #tpu.dot_dimension_numbers<[1], [0], [0], [1], [0, 0, 1, 1], [], []>} : vector<8x32xf32>, vector<32x32xf32>, vector<8x32xf32> -> vector<8x32xf32>
    %35 = arith.addf %13, %34 : vector<8x32xf32>
    %36 = math.tanh %35 : vector<8x32xf32>
    %cst_15 = arith.constant dense<0.000000e+00> : vector<8x32xf32>
    %37 = tpu.matmul %36, %2, %cst_15 {dimension_numbers = #tpu.dot_dimension_numbers<[1], [0], [0], [1], [0, 0, 1, 1], [], []>} : vector<8x32xf32>, vector<32x32xf32>, vector<8x32xf32> -> vector<8x32xf32>
    %38 = arith.addf %14, %37 : vector<8x32xf32>
    %39 = math.tanh %38 : vector<8x32xf32>
    %40 = tpu.concatenate %18, %21, %24, %27, %30, %33, %36, %39 in 0 : vector<8x32xf32>, vector<8x32xf32>, vector<8x32xf32>, vector<8x32xf32>, vector<8x32xf32>, vector<8x32xf32>, vector<8x32xf32>, vector<8x32xf32> -> vector<64x32xf32>
    %c0_16 = arith.constant 0 : index
    %c0_17 = arith.constant 0 : index
    %41 = vector.load %arg4[%c0_16, %c0_17] : memref<32x32xf32, #tpu.memory_space<vmem>>, vector<32x32xf32>
    %c0_18 = arith.constant 0 : index
    %c0_19 = arith.constant 0 : index
    %42 = vector.load %arg5[%c0_18, %c0_19] : memref<32x32xf32, #tpu.memory_space<vmem>>, vector<32x32xf32>
    %c0_20 = arith.constant 0 : index
    %c0_21 = arith.constant 0 : index
    %43 = vector.load %arg6[%c0_20, %c0_21] : memref<1x32xf32, #tpu.memory_space<vmem>>, vector<1x32xf32>
    %cst_22 = arith.constant dense<0.000000e+00> : vector<64x32xf32>
    %44 = tpu.matmul %40, %41, %cst_22 {dimension_numbers = #tpu.dot_dimension_numbers<[1], [0], [0], [1], [0, 0, 1, 1], [], []>} : vector<64x32xf32>, vector<32x32xf32>, vector<64x32xf32> -> vector<64x32xf32>
    %45 = vector.broadcast %43 : vector<1x32xf32> to vector<64x32xf32>
    %46 = arith.addf %44, %45 : vector<64x32xf32>
    %47 = vector.extract_strided_slice %46 {offsets = [0, 0], sizes = [8, 32], strides = [1, 1]} : vector<64x32xf32> to vector<8x32xf32>
    %48 = vector.extract_strided_slice %46 {offsets = [8, 0], sizes = [8, 32], strides = [1, 1]} : vector<64x32xf32> to vector<8x32xf32>
    %49 = vector.extract_strided_slice %46 {offsets = [16, 0], sizes = [8, 32], strides = [1, 1]} : vector<64x32xf32> to vector<8x32xf32>
    %50 = vector.extract_strided_slice %46 {offsets = [24, 0], sizes = [8, 32], strides = [1, 1]} : vector<64x32xf32> to vector<8x32xf32>
    %51 = vector.extract_strided_slice %46 {offsets = [32, 0], sizes = [8, 32], strides = [1, 1]} : vector<64x32xf32> to vector<8x32xf32>
    %52 = vector.extract_strided_slice %46 {offsets = [40, 0], sizes = [8, 32], strides = [1, 1]} : vector<64x32xf32> to vector<8x32xf32>
    %53 = vector.extract_strided_slice %46 {offsets = [48, 0], sizes = [8, 32], strides = [1, 1]} : vector<64x32xf32> to vector<8x32xf32>
    %54 = vector.extract_strided_slice %46 {offsets = [56, 0], sizes = [8, 32], strides = [1, 1]} : vector<64x32xf32> to vector<8x32xf32>
    %cst_23 = arith.constant 0.000000e+00 : f32
    %55 = vector.broadcast %cst_23 : f32 to vector<8x32xf32>
    %cst_24 = arith.constant dense<0.000000e+00> : vector<8x32xf32>
    %56 = tpu.matmul %55, %42, %cst_24 {dimension_numbers = #tpu.dot_dimension_numbers<[1], [0], [0], [1], [0, 0, 1, 1], [], []>} : vector<8x32xf32>, vector<32x32xf32>, vector<8x32xf32> -> vector<8x32xf32>
    %57 = arith.addf %47, %56 : vector<8x32xf32>
    %58 = math.tanh %57 : vector<8x32xf32>
    %cst_25 = arith.constant dense<0.000000e+00> : vector<8x32xf32>
    %59 = tpu.matmul %58, %42, %cst_25 {dimension_numbers = #tpu.dot_dimension_numbers<[1], [0], [0], [1], [0, 0, 1, 1], [], []>} : vector<8x32xf32>, vector<32x32xf32>, vector<8x32xf32> -> vector<8x32xf32>
    %60 = arith.addf %48, %59 : vector<8x32xf32>
    %61 = math.tanh %60 : vector<8x32xf32>
    %cst_26 = arith.constant dense<0.000000e+00> : vector<8x32xf32>
    %62 = tpu.matmul %61, %42, %cst_26 {dimension_numbers = #tpu.dot_dimension_numbers<[1], [0], [0], [1], [0, 0, 1, 1], [], []>} : vector<8x32xf32>, vector<32x32xf32>, vector<8x32xf32> -> vector<8x32xf32>
    %63 = arith.addf %49, %62 : vector<8x32xf32>
    %64 = math.tanh %63 : vector<8x32xf32>
    %cst_27 = arith.constant dense<0.000000e+00> : vector<8x32xf32>
    %65 = tpu.matmul %64, %42, %cst_27 {dimension_numbers = #tpu.dot_dimension_numbers<[1], [0], [0], [1], [0, 0, 1, 1], [], []>} : vector<8x32xf32>, vector<32x32xf32>, vector<8x32xf32> -> vector<8x32xf32>
    %66 = arith.addf %50, %65 : vector<8x32xf32>
    %67 = math.tanh %66 : vector<8x32xf32>
    %cst_28 = arith.constant dense<0.000000e+00> : vector<8x32xf32>
    %68 = tpu.matmul %67, %42, %cst_28 {dimension_numbers = #tpu.dot_dimension_numbers<[1], [0], [0], [1], [0, 0, 1, 1], [], []>} : vector<8x32xf32>, vector<32x32xf32>, vector<8x32xf32> -> vector<8x32xf32>
    %69 = arith.addf %51, %68 : vector<8x32xf32>
    %70 = math.tanh %69 : vector<8x32xf32>
    %cst_29 = arith.constant dense<0.000000e+00> : vector<8x32xf32>
    %71 = tpu.matmul %70, %42, %cst_29 {dimension_numbers = #tpu.dot_dimension_numbers<[1], [0], [0], [1], [0, 0, 1, 1], [], []>} : vector<8x32xf32>, vector<32x32xf32>, vector<8x32xf32> -> vector<8x32xf32>
    %72 = arith.addf %52, %71 : vector<8x32xf32>
    %73 = math.tanh %72 : vector<8x32xf32>
    %cst_30 = arith.constant dense<0.000000e+00> : vector<8x32xf32>
    %74 = tpu.matmul %73, %42, %cst_30 {dimension_numbers = #tpu.dot_dimension_numbers<[1], [0], [0], [1], [0, 0, 1, 1], [], []>} : vector<8x32xf32>, vector<32x32xf32>, vector<8x32xf32> -> vector<8x32xf32>
    %75 = arith.addf %53, %74 : vector<8x32xf32>
    %76 = math.tanh %75 : vector<8x32xf32>
    %cst_31 = arith.constant dense<0.000000e+00> : vector<8x32xf32>
    %77 = tpu.matmul %76, %42, %cst_31 {dimension_numbers = #tpu.dot_dimension_numbers<[1], [0], [0], [1], [0, 0, 1, 1], [], []>} : vector<8x32xf32>, vector<32x32xf32>, vector<8x32xf32> -> vector<8x32xf32>
    %78 = arith.addf %54, %77 : vector<8x32xf32>
    %79 = math.tanh %78 : vector<8x32xf32>
    %80 = tpu.concatenate %58, %61, %64, %67, %70, %73, %76, %79 in 0 : vector<8x32xf32>, vector<8x32xf32>, vector<8x32xf32>, vector<8x32xf32>, vector<8x32xf32>, vector<8x32xf32>, vector<8x32xf32>, vector<8x32xf32> -> vector<64x32xf32>
    %c0_32 = arith.constant 0 : index
    %c0_33 = arith.constant 0 : index
    %81 = vector.load %arg7[%c0_32, %c0_33] : memref<32x128xf32, #tpu.memory_space<vmem>>, vector<32x128xf32>
    %cst_34 = arith.constant dense<0.000000e+00> : vector<64x128xf32>
    %82 = tpu.matmul %80, %81, %cst_34 {dimension_numbers = #tpu.dot_dimension_numbers<[1], [0], [0], [1], [0, 0, 1, 1], [], []>} : vector<64x32xf32>, vector<32x128xf32>, vector<64x128xf32> -> vector<64x128xf32>
    %c0_35 = arith.constant 0 : index
    %c0_36 = arith.constant 0 : index
    %83 = vector.load %arg8[%c0_35, %c0_36] : memref<1x128xf32, #tpu.memory_space<vmem>>, vector<1x128xf32>
    %84 = vector.broadcast %83 : vector<1x128xf32> to vector<64x128xf32>
    %85 = arith.addf %82, %84 : vector<64x128xf32>
    %cst_37 = arith.constant dense<0xFF800000> : vector<64xf32>
    %86 = vector.multi_reduction <maximumf>, %85, %cst_37 [1] : vector<64x128xf32> to vector<64xf32>
    %87 = vector.shape_cast %86 : vector<64xf32> to vector<64x1xf32>
    %88 = vector.broadcast %87 : vector<64x1xf32> to vector<64x128xf32>
    %89 = arith.subf %85, %88 : vector<64x128xf32>
    %90 = math.exp %89 : vector<64x128xf32>
    %cst_38 = arith.constant dense<0.000000e+00> : vector<64xf32>
    %91 = vector.multi_reduction <add>, %90, %cst_38 [1] : vector<64x128xf32> to vector<64xf32>
    %92 = vector.shape_cast %91 : vector<64xf32> to vector<64x1xf32>
    %93 = tpu.reciprocal %92 {approx = true} : vector<64x1xf32> -> vector<64x1xf32>
    %94 = vector.broadcast %93 : vector<64x1xf32> to vector<64x128xf32>
    %95 = arith.mulf %90, %94 : vector<64x128xf32>
    %c0_39 = arith.constant 0 : index
    %c0_40 = arith.constant 0 : index
    %96 = vector.load %arg9[%c0_39, %c0_40] : memref<64x128xf32, #tpu.memory_space<vmem>>, vector<64x128xf32>
    tpu.vector_store %arg9[%c0_39, %c0_40], %95 {strides = array<i32>} : memref<64x128xf32, #tpu.memory_space<vmem>>, vector<64x128xf32>,
    %97 = tpu.concatenate %39, %79 in 0 : vector<8x32xf32>, vector<8x32xf32> -> vector<16x32xf32>
    %c0_41 = arith.constant 0 : index
    %c0_42 = arith.constant 0 : index
    %98 = vector.load %arg10[%c0_41, %c0_42] : memref<16x32xf32, #tpu.memory_space<vmem>>, vector<16x32xf32>
    tpu.vector_store %arg10[%c0_41, %c0_42], %97 {strides = array<i32>} : memref<16x32xf32, #tpu.memory_space<vmem>>, vector<16x32xf32>,
    return
  }
}

</mosaic_0001>

<bundles_post_ra>
// kernel: rnn_forward_pallas.1
= control target key start
LH: loop header
LB: loop body
LE: loop exit
PB: predicated region body
PF: predicated region fallthrough
CT: control target
= control target key end

     0   :  { %16 = vsyncpa [#allocation3], 0  ;;  %s874_s16 = smov [#allocation2]   ;;  %s875_s18 = smov 128   ;;  %s1181_s0 = inlined_call_operand.vmem [shape: f32[64,16], index: 0, kind: input, shape index: {}]   ;;  %s1182_s1 = inlined_call_operand.vmem [shape: f32[16,32], index: 1, kind: input, shape index: {}]   ;;  %s1183_s2 = inlined_call_operand.vmem [shape: f32[32,32], index: 2, kind: input, shape index: {}]   ;;  %s1184_s3 = inlined_call_operand.vmem [shape: f32[1,32], index: 3, kind: input, shape index: {}]   ;;  %s1185_s4 = inlined_call_operand.vmem [shape: f32[32,32], index: 4, kind: input, shape index: {}]   ;;  %s1186_s5 = inlined_call_operand.vmem [shape: f32[32,32], index: 5, kind: input, shape index: {}]   ;;  %s1187_s6 = inlined_call_operand.vmem [shape: f32[1,32], index: 6, kind: input, shape index: {}]   ;;  %s1188_s7 = inlined_call_operand.hbm [shape: f32[32,128], index: 7, kind: input, shape index: {}]   ;;  %s1189_s8 = inlined_call_operand.vmem [shape: f32[1,128], index: 8, kind: input, shape index: {}]   ;;  %s1190_s9 = inlined_call_operand.vmem [shape: f32[64,128], index: 9, kind: output, shape index: {0}]   ;;  %s1191_s10 = inlined_call_operand.vmem [shape: f32[16,32], index: 10, kind: output, shape index: {1}]  }
   0x1   :  { %s35_s15 = sshll.u32 %s1188_s7, 4  ;;  %s37_s17 = sshll.u32 %s874_s16, 4  ;;  %s36_s15 = int_to_ptr.hbm [resolvable:$true] %s35_s15  ;;  %s38_s17 = int_to_ptr.vmem [resolvable:$true] %s37_s17 }
   0x2   :  { %s876_s19 = smov 8  }
   0x3   :  { %43 = dma.hbm_to_vmem [thread:$0]  %s36_s15, 512, %s38_s17, [#allocation3], %s875_s18, %s875_s18, %s876_s19  }
   0x4   :  { %872 = dma.done.wait [#allocation3], 512  }
   0x5   :  { %873 = vsyncadd [#allocation3], 4294966784  ;;  %v63_v0 = vld [vmem:[%s1183_s2 + $0x18] sm:$0xff]  ;;  %v59_v1 = vld [vmem:[%s1182_s1 + $0x8] sm:$0xff]  ;;  %vm68_vm0 = vcmask 130048   ;;  %v877_v7 = vmov 0.0  }
   0x6   :  { %v62_v2 = vld [vmem:[%s1183_s2 + $0x10] sm:$0xff]  ;;  %150 = vmatpush.msra.mxu1 %v63_v0  ;;  %107 = vmatpush.msra.mxu0 %v59_v1  ;;  %v58_v3 = vld [vmem:[%s1182_s1] sm:$0xff]  ;;  %v61_v5 = vld [vmem:[%s1183_s2 + $0x8] sm:$0xff]  ;;  %vm134_vm1 = vcmask 261120  }
   0x7   :  { %v50_v4 = vld [vmem:[%s1181_s0] sm:$0xff]  ;;  %175 = vmatpush.msra.mxu2 %v63_v0  ;;  %200 = vmatpush.msra.mxu3 %v63_v0  ;;  %v51_v8 = vld [vmem:[%s1181_s0 + $0x8] sm:$0xff]  ;;  %v52_v15 = vld [vmem:[%s1181_s0 + $0x10] sm:$0xff] }
   0x8   :  { %151 = vmatpush.msra.mxu1 %v62_v2  ;;  %108 = vmatpush.msra.mxu0 %v58_v3  ;;  %v60_v6 = vld [vmem:[%s1183_s2] sm:$0xff]  ;;  %v53_v21 = vld [vmem:[%s1181_s0 + $0x18] sm:$0xff]  ;;  %v337_v34 = vld [vmem:[%s1185_s4 + $0x10] sm:$0xff] }
   0x9   :  { %731 = vmatmul.msk.f32.vlgmr.msra.gmra.mxu0 %vm68_vm0, %v50_v4  ;;  %176 = vmatpush.msra.mxu2 %v62_v2  ;;  %v966_v9 = vld [vmem:[%s1184_s3] ss:$0 sm:$0xff]  ;;  %v338_v33 = vld [vmem:[%s1185_s4 + $0x18] sm:$0xff]  ;;  %v55_v35 = vld [vmem:[%s1181_s0 + $0x28] sm:$0xff] }
   0xa   :  { %152 = vmatpush.msra.mxu1 %v61_v5  ;;  %201 = vmatpush.msra.mxu3 %v62_v2  ;;  %v54_v27 = vld [vmem:[%s1181_s0 + $0x20] sm:$0xff]  ;;  %v336_v36 = vld [vmem:[%s1185_s4 + $0x8] sm:$0xff]  ;;  %v56_v43 = vld [vmem:[%s1181_s0 + $0x30] sm:$0xff] }
   0xb   :  { %177 = vmatpush.msra.mxu2 %v61_v5  ;;  %v335_v37 = vld [vmem:[%s1185_s4] sm:$0xff]  ;;  %v1018_v44 = vld [vmem:[%s1186_s5 + $0x18] sm:$0xff]  ;;  %v1023_v45 = vld [vmem:[%s1186_s5 + $0x10] sm:$0xff] }
   0xc   :  { %153 = vmatpush.msra.mxu1 %v60_v6  ;;  %202 = vmatpush.msra.mxu3 %v61_v5  ;;  %v1030_v46 = vld [vmem:[%s1186_s5 + $0x8] sm:$0xff]  ;;  %v1039_v47 = vld [vmem:[%s1186_s5] sm:$0xff]  ;;  %v57_v53 = vld [vmem:[%s1181_s0 + $0x38] sm:$0xff] }
   0xd   :  { %154 = vmatmul.f32.vlgmr.msra.gmra.mxu1 %v877_v7  ;;  %178 = vmatpush.msra.mxu2 %v60_v6  ;;  %v1059_v54 = vld [vmem:[#allocation2 + $0x18] sm:$0xff]  ;;  %v1062_v55 = vld [vmem:[#allocation2 + $0x10] sm:$0xff]  ;;  %v1064_v56 = vld [vmem:[#allocation2 + $0x8] sm:$0xff] }
   0xe   :  { %203 = vmatpush.msra.mxu3 %v60_v6  ;;  %225 = vmatpush.msrb.mxu1 %v63_v0  ;;  %v1067_v57 = vld [vmem:[#allocation2] sm:$0xff] }
   0xf   :  { %250 = vmatpush.msrb.mxu2 %v63_v0  ;;  %611 = vmatpush.msrb.mxu0 %v1059_v54  ;;  %v1075_v62 = vld [vmem:[%s1187_s6] ss:$0 sm:$0xff] }
  0x10   :  { %275 = vmatpush.msrb.mxu3 %v63_v0  ;;  %226 = vmatpush.msrb.mxu1 %v62_v2 }
  0x11   :  { %251 = vmatpush.msrb.mxu2 %v62_v2  ;;  %732 = vmatmul.msk.f32.gmra.mxu0 %vm68_vm0, %v51_v8 }
  0x12   :  { %276 = vmatpush.msrb.mxu3 %v62_v2  ;;  %227 = vmatpush.msrb.mxu1 %v61_v5 }
  0x13   :  { %252 = vmatpush.msrb.mxu2 %v61_v5  ;;  %612 = vmatpush.msrb.mxu0 %v1062_v55 }
  0x14   :  { %277 = vmatpush.msrb.mxu3 %v61_v5  ;;  %228 = vmatpush.msrb.mxu1 %v60_v6 }
  0x15   :  { %253 = vmatpush.msrb.mxu2 %v60_v6  ;;  %613 = vmatpush.msrb.mxu0 %v1064_v56 }
  0x16   :  { %278 = vmatpush.msrb.mxu3 %v60_v6  ;;  %300 = vmatpush.msra.mxu1 %v63_v0 }
  0x17   :  { %614 = vmatpush.msrb.mxu0 %v1067_v57 }
  0x18   :  { %301 = vmatpush.msra.mxu1 %v62_v2 }
  0x19   :  { %733 = vmatmul.msk.f32.gmra.mxu0 %vm68_vm0, %v52_v15 }
  0x1a   :  { %302 = vmatpush.msra.mxu1 %v61_v5 }
  0x1c   :  { %303 = vmatpush.msra.mxu1 %v60_v6 }
  0x21   :  { %734 = vmatmul.msk.f32.gmra.mxu0 %vm68_vm0, %v53_v21 }
  0x29   :  { %735 = vmatmul.msk.f32.gmra.mxu0 %vm68_vm0, %v54_v27 }
  0x31   :  { %736 = vmatmul.msk.f32.gmra.mxu0 %vm68_vm0, %v55_v35 }
  0x39   :  { %737 = vmatmul.msk.f32.gmra.mxu0 %vm68_vm0, %v56_v43 }
  0x41   :  { %738 = vmatmul.msk.f32.gmra.mxu0 %vm68_vm0, %v57_v53 }
  0x86   :  { %v110_v10 = vpop.f32.mrf.mxu0 }
  0x87   :  { %v111_v11 = vadd.f32 %v966_v9, %v110_v10 }
  0x8a   :  { %v155_v12 = vpop.f32.mrf.mxu1 }
  0x8b   :  { %v158_v13 = vadd.f32 %v155_v12, %v111_v11 }
  0x8d   :  { %784 = vtanh.f32 %v158_v13 }
  0x8e   :  { %v113_v16 = vpop.f32.mrf.mxu0 }
  0x8f   :  { %v114_v17 = vadd.f32 %v966_v9, %v113_v16 }
  0x93   :  { %v785_v14 = vpop.eup %784 }
  0x94   :  { %739 = vmatmul.msk.f32.vlgmr.msra.gmra.mxu2 %vm134_vm1, %v785_v14 }
  0x95   :  { %325 = vmatpush.msra.mxu2 %v63_v0 }
  0x96   :  { %v116_v22 = vpop.f32.mrf.mxu0 }
  0x97   :  { %326 = vmatpush.msra.mxu2 %v62_v2  ;;  %v117_v23 = vadd.f32 %v966_v9, %v116_v22 }
  0x99   :  { %327 = vmatpush.msra.mxu2 %v61_v5 }
  0x9b   :  { %328 = vmatpush.msra.mxu2 %v60_v6 }
  0x9e   :  { %v119_v28 = vpop.f32.mrf.mxu0 }
  0x9f   :  { %v120_v29 = vadd.f32 %v966_v9, %v119_v28 }
  0xa6   :  { %v122_v38 = vpop.f32.mrf.mxu0 }
  0xa7   :  { %v123_v39 = vadd.f32 %v966_v9, %v122_v38 }
  0xae   :  { %v125_v48 = vpop.f32.mrf.mxu0 }
  0xaf   :  { %v126_v49 = vadd.f32 %v966_v9, %v125_v48 }
  0xb6   :  { %v128_v58 = vpop.f32.mrf.mxu0 }
  0xb7   :  { %v129_v59 = vadd.f32 %v966_v9, %v128_v58 }
  0xbe   :  { %v131_v5 = vpop.f32.mrf.mxu0 }
  0xbf   :  { %v132_v6 = vadd.f32 %v966_v9, %v131_v5 }
 0x117   :  { %v180_v18 = vpop.f32.mrf.mxu2 }
 0x118   :  { %v183_v19 = vadd.f32 %v180_v18, %v114_v17 }
 0x11a   :  { %786 = vtanh.f32 %v183_v19 }
 0x120   :  { %v787_v20 = vpop.eup %786 }
 0x121   :  { %740 = vmatmul.msk.f32.vlgmr.msra.gmra.mxu3 %vm134_vm1, %v787_v20 }
 0x122   :  { %362 = vmatpush.msra.mxu3 %v338_v33 }
 0x124   :  { %363 = vmatpush.msra.mxu3 %v337_v34 }
 0x126   :  { %364 = vmatpush.msra.mxu3 %v336_v36 }
 0x128   :  { %365 = vmatpush.msra.mxu3 %v335_v37 }
 0x1a4   :  { %v205_v24 = vpop.f32.mrf.mxu3 }
 0x1a5   :  { %v208_v25 = vadd.f32 %v205_v24, %v117_v23 }
 0x1a7   :  { %788 = vtanh.f32 %v208_v25 }
 0x1ad   :  { %v789_v26 = vpop.eup %788 }
 0x1ae   :  { %741 = vmatmul.msk.f32.vlgmr.msrb.gmra.mxu1 %vm134_vm1, %v789_v26 }
 0x1af   :  { %403 = vmatpush.msrb.mxu1 %v1018_v44 }
 0x1b1   :  { %404 = vmatpush.msrb.mxu1 %v1023_v45 }
 0x1b3   :  { %405 = vmatpush.msrb.mxu1 %v1030_v46 }
 0x1b5   :  { %406 = vmatpush.msrb.mxu1 %v1039_v47 }
 0x22b   :  { %v230_v30 = vpop.f32.mrf.mxu1 }
 0x22c   :  { %v233_v31 = vadd.f32 %v230_v30, %v120_v29 }
 0x22e   :  { %790 = vtanh.f32 %v233_v31 }
 0x234   :  { %v791_v32 = vpop.eup %790 }
 0x235   :  { %742 = vmatmul.msk.f32.vlgmr.msrb.gmra.mxu2 %vm134_vm1, %v791_v32 }
 0x236   :  { %428 = vmatpush.msrb.mxu2 %v1018_v44 }
 0x238   :  { %429 = vmatpush.msrb.mxu2 %v1023_v45 }
 0x23a   :  { %430 = vmatpush.msrb.mxu2 %v1030_v46 }
 0x23c   :  { %431 = vmatpush.msrb.mxu2 %v1039_v47 }
 0x2b8   :  { %v255_v40 = vpop.f32.mrf.mxu2 }
 0x2b9   :  { %v258_v41 = vadd.f32 %v255_v40, %v123_v39 }
 0x2bb   :  { %792 = vtanh.f32 %v258_v41 }
 0x2c1   :  { %v793_v42 = vpop.eup %792 }
 0x2c2   :  { %743 = vmatmul.msk.f32.vlgmr.msrb.gmra.mxu3 %vm134_vm1, %v793_v42 }
 0x2ca   :  { %746 = vmatmul.msk.f32.vlgmr.msra.gmra.mxu3 %vm134_vm1, %v785_v14 }
 0x2d2   :  { %747 = vmatmul.msk.f32.gmra.mxu3 %vm134_vm1, %v787_v20 }
 0x2da   :  { %748 = vmatmul.msk.f32.gmra.mxu3 %vm134_vm1, %v789_v26 }
 0x2e2   :  { %749 = vmatmul.msk.f32.gmra.mxu3 %vm134_vm1, %v791_v32 }
 0x2ea   :  { %750 = vmatmul.msk.f32.gmra.mxu3 %vm134_vm1, %v793_v42 }
 0x345   :  { %v280_v50 = vpop.f32.mrf.mxu3 }
 0x346   :  { %v283_v51 = vadd.f32 %v280_v50, %v126_v49 }
 0x348   :  { %794 = vtanh.f32 %v283_v51 }
 0x34d   :  { %v367_v63 = vpop.f32.mrf.mxu3 }
 0x34e   :  { %v795_v52 = vpop.eup %794  ;;  %v368_v0 = vadd.f32 %v1075_v62, %v367_v63 }
 0x34f   :  { %744 = vmatmul.msk.f32.vlgmr.msra.gmra.mxu1 %vm134_vm1, %v795_v52  ;;  %751 = vmatmul.msk.f32.gmra.mxu3 %vm134_vm1, %v795_v52 }
 0x350   :  { %453 = vmatpush.msra.mxu1 %v1018_v44 }
 0x352   :  { %454 = vmatpush.msra.mxu1 %v1023_v45 }
 0x354   :  { %455 = vmatpush.msra.mxu1 %v1030_v46 }
 0x355   :  { %v370_v13 = vpop.f32.mrf.mxu3 }
 0x356   :  { %456 = vmatpush.msra.mxu1 %v1039_v47  ;;  %v371_v14 = vadd.f32 %v1075_v62, %v370_v13 }
 0x357   :  { %407 = vmatmul.f32.vlgmr.msrb.gmra.mxu1 %v877_v7  ;;  %v1094_v7 = vld [vmem:[%s1189_s8] ss:$0 sm:$0xff] }
 0x358   :  { %503 = vmatpush.msrb.mxu1 %v1018_v44 }
 0x35a   :  { %504 = vmatpush.msrb.mxu1 %v1023_v45 }
 0x35c   :  { %505 = vmatpush.msrb.mxu1 %v1030_v46 }
 0x35d   :  { %v373_v18 = vpop.f32.mrf.mxu3 }
 0x35e   :  { %506 = vmatpush.msrb.mxu1 %v1039_v47  ;;  %v374_v19 = vadd.f32 %v1075_v62, %v373_v18 }
 0x365   :  { %v376_v25 = vpop.f32.mrf.mxu3 }
 0x366   :  { %v377_v26 = vadd.f32 %v1075_v62, %v376_v25 }
 0x36d   :  { %v379_v30 = vpop.f32.mrf.mxu3 }
 0x36e   :  { %v380_v31 = vadd.f32 %v1075_v62, %v379_v30 }
 0x3cc   :  { %v305_v60 = vpop.f32.mrf.mxu1 }
 0x3cd   :  { %v308_v61 = vadd.f32 %v305_v60, %v129_v59 }
 0x3cf   :  { %796 = vtanh.f32 %v308_v61 }
 0x3d2   :  { %v382_v35 = vpop.f32.mrf.mxu3 }
 0x3d3   :  { %v383_v36 = vadd.f32 %v1075_v62, %v382_v35 }
 0x3d4   :  { %v408_v1 = vpop.f32.mrf.mxu1 }
 0x3d5   :  { %v797_v2 = vpop.eup %796  ;;  %v411_v3 = vadd.f32 %v408_v1, %v368_v0 }
 0x3d6   :  { %745 = vmatmul.msk.f32.vlgmr.msra.gmra.mxu2 %vm134_vm1, %v797_v2  ;;  %752 = vmatmul.msk.f32.gmra.mxu3 %vm134_vm1, %v797_v2 }
 0x3d7   :  { %798 = vtanh.f32 %v411_v3  ;;  %478 = vmatpush.msra.mxu2 %v1018_v44 }
 0x3d9   :  { %479 = vmatpush.msra.mxu2 %v1023_v45 }
 0x3db   :  { %480 = vmatpush.msra.mxu2 %v1030_v46 }
 0x3dd   :  { %v799_v4 = vpop.eup %798  ;;  %481 = vmatpush.msra.mxu2 %v1039_v47 }
 0x3de   :  { %754 = vmatmul.msk.f32.vlgmr.msrb.gmra.mxu2 %vm134_vm1, %v799_v4  ;;  %761 = vmatmul.msk.f32.vlgmr.msrb.gmra.mxu0 %vm134_vm1, %v799_v4 }
 0x3df   :  { %528 = vmatpush.msrb.mxu2 %v1018_v44 }
 0x3e1   :  { %529 = vmatpush.msrb.mxu2 %v1023_v45 }
 0x3e3   :  { %530 = vmatpush.msrb.mxu2 %v1030_v46 }
 0x3e5   :  { %531 = vmatpush.msrb.mxu2 %v1039_v47 }
 0x459   :  { %v330_v8 = vpop.f32.mrf.mxu2  ;;  %v385_v40 = vpop.f32.mrf.mxu3 }
 0x45a   :  { %v333_v10 = vadd.f32 %v330_v8, %v132_v6  ;;  %v386_v41 = vadd.f32 %v1075_v62, %v385_v40 }
 0x45b   :  { %v616_v11 = vpop.f32.mrf.mxu0 }
 0x45c   :  { %800 = vtanh.f32 %v333_v10  ;;  %v1097_v12 = vadd.f32 %v1094_v7, %v616_v11 }
 0x45e   :  { %640 = vmax.xlane.f32.xlu0 %v1097_v12 }
 0x461   :  { %v433_v15 = vpop.f32.mrf.mxu2 }
 0x462   :  { %v801_v16 = vpop.eup %800  ;;  %v436_v9 = vadd.f32 %v433_v15, %v371_v14 }
 0x463   :  { %720 = vst.msk [vmem:[%s1191_s10] sm:$0xff] %vm134_vm1, %v801_v16  ;;  %753 = vmatmul.msk.f32.gmra.mxu3 %vm134_vm1, %v801_v16 }
 0x464   :  { %802 = vtanh.f32 %v436_v9 }
 0x46a   :  { %v803_v17 = vpop.eup %802 }
 0x46b   :  { %755 = vmatmul.msk.f32.vlgmr.msra.gmra.mxu1 %vm134_vm1, %v803_v17  ;;  %762 = vmatmul.msk.f32.gmra.mxu0 %vm134_vm1, %v803_v17 }
 0x46c   :  { %553 = vmatpush.msra.mxu1 %v1018_v44 }
 0x46e   :  { %554 = vmatpush.msra.mxu1 %v1023_v45 }
 0x470   :  { %555 = vmatpush.msra.mxu1 %v1030_v46 }
 0x472   :  { %556 = vmatpush.msra.mxu1 %v1039_v47 }
 0x4e6   :  { %v388_v51 = vpop.f32.mrf.mxu3 }
 0x4e7   :  { %v389_v52 = vadd.f32 %v1075_v62, %v388_v51 }
 0x4e8   :  { %v458_v20 = vpop.f32.mrf.mxu1  ;;  %v619_v21 = vpop.f32.mrf.mxu0 }
 0x4e9   :  { %v461_v22 = vadd.f32 %v458_v20, %v374_v19  ;;  %v1114_v23 = vadd.f32 %v1094_v7, %v619_v21 }
 0x4eb   :  { %804 = vtanh.f32 %v461_v22  ;;  %642 = vmax.xlane.f32.xlu0 %v1114_v23 }
 0x4f1   :  { %v805_v24 = vpop.eup %804 }
 0x4f2   :  { %756 = vmatmul.msk.f32.vlgmr.msra.gmra.mxu2 %vm134_vm1, %v805_v24 }
 0x4f3   :  { %578 = vmatpush.msra.mxu2 %v1018_v44 }
 0x4f5   :  { %579 = vmatpush.msra.mxu2 %v1023_v45 }
 0x4f7   :  { %580 = vmatpush.msra.mxu2 %v1030_v46 }
 0x4f9   :  { %581 = vmatpush.msra.mxu2 %v1039_v47 }
 0x575   :  { %v483_v27 = vpop.f32.mrf.mxu2 }
 0x576   :  { %v486_v28 = vadd.f32 %v483_v27, %v377_v26 }
 0x578   :  { %806 = vtanh.f32 %v486_v28 }
 0x57e   :  { %v807_v29 = vpop.eup %806 }
 0x57f   :  { %757 = vmatmul.msk.f32.vlgmr.msrb.gmra.mxu1 %vm134_vm1, %v807_v29 }
 0x580   :  { %769 = vmatpush.msrb.mxu1 %v1059_v54 }
 0x582   :  { %771 = vmatpush.msrb.mxu1 %v1062_v55 }
 0x584   :  { %773 = vmatpush.msrb.mxu1 %v1064_v56 }
 0x586   :  { %775 = vmatpush.msrb.mxu1 %v1067_v57 }
 0x5fc   :  { %v508_v32 = vpop.f32.mrf.mxu1 }
 0x5fd   :  { %v511_v33 = vadd.f32 %v508_v32, %v380_v31 }
 0x5ff   :  { %808 = vtanh.f32 %v511_v33 }
 0x605   :  { %v809_v34 = vpop.eup %808 }
 0x606   :  { %758 = vmatmul.msk.f32.vlgmr.msrb.gmra.mxu2 %vm134_vm1, %v809_v34 }
 0x607   :  { %770 = vmatpush.msrb.mxu2 %v1059_v54  ;;  %v641_v54 = vpop.xlane.xlu0 %640 }
 0x609   :  { %772 = vmatpush.msrb.mxu2 %v1062_v55 }
 0x60b   :  { %774 = vmatpush.msrb.mxu2 %v1064_v56 }
 0x60d   :  { %776 = vmatpush.msrb.mxu2 %v1067_v57  ;;  %v656_v57 = vsub.f32 %v1097_v12, %v641_v54 }
 0x60f   :  { %v664_v58 = vmul.f32 1.442695, %v656_v57  ;;  %v643_v59 = vpop.xlane.xlu0 %642 }
 0x610   :  { %v657_v62 = vsub.f32 %v1114_v23, %v643_v59 }
 0x612   :  { %v666_v2 = vmul.f32 1.442695, %v657_v62 }
 0x689   :  { %v533_v37 = vpop.f32.mrf.mxu2 }
 0x68a   :  { %v536_v38 = vadd.f32 %v533_v37, %v383_v36 }
 0x68c   :  { %810 = vtanh.f32 %v536_v38 }
 0x692   :  { %v811_v39 = vpop.eup %810 }
 0x693   :  { %759 = vmatmul.msk.f32.vlgmr.msra.gmra.mxu1 %vm134_vm1, %v811_v39 }
 0x69b   :  { %763 = vmatmul.msk.f32.vlgmr.msrb.gmra.mxu1 %vm134_vm1, %v805_v24 }
 0x6a3   :  { %764 = vmatmul.msk.f32.gmra.mxu1 %vm134_vm1, %v807_v29 }
 0x6ab   :  { %765 = vmatmul.msk.f32.gmra.mxu1 %vm134_vm1, %v809_v34 }
 0x710   :  { %v558_v42 = vpop.f32.mrf.mxu1 }
 0x711   :  { %v561_v43 = vadd.f32 %v558_v42, %v386_v41 }
 0x713   :  { %812 = vtanh.f32 %v561_v43 }
 0x718   :  { %v622_v44 = vpop.f32.mrf.mxu1 }
 0x719   :  { %v813_v45 = vpop.eup %812  ;;  %v623_v46 = vadd.f32 %v1094_v7, %v622_v44 }
 0x71a   :  { %760 = vmatmul.msk.f32.vlgmr.msra.gmra.mxu2 %vm134_vm1, %v813_v45 }
 0x71b   :  { %644 = vmax.xlane.f32.xlu1 %v623_v46 }
 0x720   :  { %v625_v47 = vpop.f32.mrf.mxu1 }
 0x721   :  { %v626_v48 = vadd.f32 %v1094_v7, %v625_v47 }
 0x722   :  { %766 = vmatmul.msk.f32.vlgmr.msrb.gmra.mxu2 %vm134_vm1, %v811_v39 }
 0x723   :  { %646 = vmax.xlane.f32.xlu1 %v626_v48 }
 0x728   :  { %v628_v49 = vpop.f32.mrf.mxu1 }
 0x729   :  { %v629_v50 = vadd.f32 %v1094_v7, %v628_v49 }
 0x72a   :  { %767 = vmatmul.msk.f32.gmra.mxu2 %vm134_vm1, %v813_v45 }
 0x72b   :  { %648 = vmax.xlane.f32.xlu2 %v629_v50 }
 0x78e   :  { %v645_v53 = vpop.xlane.xlu1 %644 }
 0x78f   :  { %v658_v18 = vsub.f32 %v623_v46, %v645_v53 }
 0x791   :  { %v668_v21 = vmul.f32 1.442695, %v658_v18 }
 0x796   :  { %v647_v63 = vpop.xlane.xlu1 %646 }
 0x797   :  { %v659_v1 = vsub.f32 %v626_v48, %v647_v63 }
 0x799   :  { %v670_v3 = vmul.f32 1.442695, %v659_v1 }
 0x79d   :  { %v583_v55 = vpop.f32.mrf.mxu2 }
 0x79e   :  { %v586_v56 = vadd.f32 %v583_v55, %v389_v52  ;;  %v649_v5 = vpop.xlane.xlu2 %648 }
 0x79f   :  { %v660_v10 = vsub.f32 %v629_v50, %v649_v5 }
 0x7a0   :  { %814 = vtanh.f32 %v586_v56 }
 0x7a1   :  { %816 = vpow2.f32 %v664_v58  ;;  %v672_v11 = vmul.f32 1.442695, %v660_v10 }
 0x7a2   :  { %818 = vpow2.f32 %v666_v2 }
 0x7a3   :  { %820 = vpow2.f32 %v670_v3 }
 0x7a4   :  { %822 = vpow2.f32 %v672_v11 }
 0x7a5   :  { %v631_v60 = vpop.f32.mrf.mxu2 }
 0x7a6   :  { %v815_v61 = vpop.eup %814  ;;  %v632_v0 = vadd.f32 %v1094_v7, %v631_v60 }
 0x7a7   :  { %721 = vst.msk [vmem:[%s1191_s10 + $0x8] sm:$0xff] %vm134_vm1, %v815_v61  ;;  %768 = vmatmul.msk.f32.gmra.mxu2 %vm134_vm1, %v815_v61  ;;  %v817_v8 = vpop.eup %816 }
 0x7a8   :  { %650 = vmax.xlane.f32.xlu2 %v632_v0  ;;  %v819_v12 = vpop.eup %818 }
 0x7a9   :  { %v821_v13 = vpop.eup %820 }
 0x7aa   :  { %v823_v14 = vpop.eup %822 }
 0x7ad   :  { %v634_v4 = vpop.f32.mrf.mxu2 }
 0x7ae   :  { %v635_v6 = vadd.f32 %v1094_v7, %v634_v4 }
 0x7b0   :  { %652 = vmax.xlane.f32.xlu0 %v635_v6  ;;  %680 = vadd.xlane.f32.xlu2 %v817_v8 }
 0x7b8   :  { %682 = vadd.xlane.f32.xlu0 %v819_v12  ;;  %686 = vadd.xlane.f32.xlu2 %v821_v13 }
 0x7c0   :  { %688 = vadd.xlane.f32.xlu0 %v823_v14 }
 0x81b   :  { %v651_v15 = vpop.xlane.xlu2 %650 }
 0x81c   :  { %v661_v28 = vsub.f32 %v632_v0, %v651_v15 }
 0x81e   :  { %v674_v30 = vmul.f32 1.442695, %v661_v28 }
 0x823   :  { %v653_v16 = vpop.xlane.xlu0 %652  ;;  %v681_v9 = vpop.xlane.xlu2 %680 }
 0x824   :  { %v662_v17 = vsub.f32 %v635_v6, %v653_v16  ;;  %824 = vrcp.f32 %v681_v9 }
 0x826   :  { %v676_v19 = vmul.f32 1.442695, %v662_v17 }
 0x828   :  { %826 = vpow2.f32 %v676_v19 }
 0x82a   :  { %v825_v20 = vpop.eup %824  ;;  %v637_v22 = vpop.f32.mrf.mxu2 }
 0x82b   :  { %v704_v23 = vmul.f32 %v825_v20, %v817_v8  ;;  %v638_v24 = vadd.f32 %v1094_v7, %v637_v22  ;;  %v683_v25 = vpop.xlane.xlu0 %682  ;;  %v687_v26 = vpop.xlane.xlu2 %686 }
 0x82c   :  { %828 = vrcp.f32 %v683_v25 }
 0x82d   :  { %712 = vst [vmem:[%s1190_s9] sm:$0xff] %v704_v23  ;;  %830 = vrcp.f32 %v687_v26  ;;  %654 = vmax.xlane.f32.xlu1 %v638_v24 }
 0x82e   :  { %v827_v27 = vpop.eup %826  ;;  %832 = vpow2.f32 %v668_v21 }
 0x82f   :  { %692 = vadd.xlane.f32.xlu2 %v827_v27 }
 0x832   :  { %v829_v29 = vpop.eup %828 }
 0x833   :  { %v831_v31 = vpop.eup %830  ;;  %v705_v32 = vmul.f32 %v829_v29, %v819_v12  ;;  %v689_v33 = vpop.xlane.xlu0 %688 }
 0x834   :  { %v833_v34 = vpop.eup %832  ;;  %v707_v7 = vmul.f32 %v831_v31, %v821_v13  ;;  %834 = vrcp.f32 %v689_v33 }
 0x835   :  { %713 = vst [vmem:[%s1190_s9 + $0x8] sm:$0xff] %v705_v32  ;;  %684 = vadd.xlane.f32.xlu1 %v833_v34  ;;  %836 = vpow2.f32 %v674_v30 }
 0x836   :  { %715 = vst [vmem:[%s1190_s9 + $0x18] sm:$0xff] %v707_v7 }
 0x83a   :  { %v835_v35 = vpop.eup %834 }
 0x83b   :  { %v708_v36 = vmul.f32 %v835_v35, %v823_v14  ;;  %v837_v37 = vpop.eup %836 }
 0x83d   :  { %716 = vst [vmem:[%s1190_s9 + $0x20] sm:$0xff] %v708_v36  ;;  %690 = vadd.xlane.f32.xlu1 %v837_v37 }
 0x8a0   :  { %v655_v38 = vpop.xlane.xlu1 %654 }
 0x8a1   :  { %v663_v39 = vsub.f32 %v638_v24, %v655_v38 }
 0x8a2   :  { %v693_v40 = vpop.xlane.xlu2 %692 }
 0x8a3   :  { %v678_v41 = vmul.f32 1.442695, %v663_v39  ;;  %838 = vrcp.f32 %v693_v40 }
 0x8a5   :  { %840 = vpow2.f32 %v678_v41 }
 0x8a8   :  { %v685_v42 = vpop.xlane.xlu1 %684 }
 0x8a9   :  { %v839_v43 = vpop.eup %838  ;;  %842 = vrcp.f32 %v685_v42 }
 0x8aa   :  { %v710_v44 = vmul.f32 %v839_v43, %v827_v27 }
 0x8ab   :  { %v841_v45 = vpop.eup %840 }
 0x8ac   :  { %718 = vst [vmem:[%s1190_s9 + $0x30] sm:$0xff] %v710_v44  ;;  %694 = vadd.xlane.f32.xlu0 %v841_v45 }
 0x8af   :  { %v843_v46 = vpop.eup %842 }
 0x8b0   :  { %v706_v47 = vmul.f32 %v843_v46, %v833_v34  ;;  %v691_v48 = vpop.xlane.xlu1 %690 }
 0x8b1   :  { %844 = vrcp.f32 %v691_v48 }
 0x8b2   :  { %714 = vst [vmem:[%s1190_s9 + $0x10] sm:$0xff] %v706_v47 }
 0x8b7   :  { %v845_v49 = vpop.eup %844 }
 0x8b8   :  { %v709_v50 = vmul.f32 %v845_v49, %v837_v37 }
 0x8ba   :  { %717 = vst [vmem:[%s1190_s9 + $0x28] sm:$0xff] %v709_v50 }
 0x91f   :  { %v695_v51 = vpop.xlane.xlu0 %694 }
 0x920   :  { %846 = vrcp.f32 %v695_v51 }
 0x926   :  { %v847_v52 = vpop.eup %846 }
 0x927   :  { %v711_v53 = vmul.f32 %v847_v52, %v841_v45 }
 0x929   :  { %719 = vst [vmem:[%s1190_s9 + $0x38] sm:$0xff] %v711_v53 }
 0x92a   :  { %730 = vsyncpa [#allocation3], 1 }

</bundles_post_ra>
